<compile_context>
chip_gen: v5e
topology: v5e:2x2
jax: 0.10.0
libtpu: 0.0.40
codegen_flags: <defaults>
</compile_context>

<pallas_src>
import functools

import jax
import jax.numpy as jnp
from jax.experimental import pallas as pl
from jax.experimental.pallas import tpu as pltpu


def mha_kernel(x_ref, w_ref, b_ref, out_ref, *, embed_dim, num_head):
    E = embed_dim
    H = num_head
    Dh = E // H

    x = x_ref[...]        # (S, E)
    w = w_ref[...]        # (E, 4E)  = [Wq^T | Wk^T | Wv^T | Wo^T]
    b = b_ref[...]        # (1, 4E)  = [bq | bk | bv | bo]

    # Fused Q/K/V projection: one MXU matmul instead of three.
    qkv = (jnp.dot(x, w[:, :3 * E], preferred_element_type=jnp.float32)
           + b[:, :3 * E])                                    # (S, 3E)

    scale = 1.0 / (Dh ** 0.5)
    q = qkv[0:1, 0:E] * scale                                 # (1, E) single query row, scale folded once
    k = qkv[:, E:2 * E]                                       # (S, E)
    v = qkv[:, 2 * E:3 * E]                                   # (S, E)

    # Head-selector matrix: sel[e, h] = 1.0 iff feature column e belongs to head h.
    e_idx = jax.lax.broadcasted_iota(jnp.int32, (E, H), 0)
    h_idx = jax.lax.broadcasted_iota(jnp.int32, (E, H), 1)
    in_head = jnp.logical_and(e_idx >= h_idx * Dh, e_idx < (h_idx + 1) * Dh)
    sel = jnp.where(in_head, jnp.float32(1.0), jnp.float32(0.0))   # (E, H)

    # Scores for all heads at once: scores[s, h] = q_h . k_h[s]
    prod = q * k                                              # (S, E), VPU broadcast mul
    scores = jax.lax.dot_general(prod, sel, (((1,), (0,)), ((), ())),
                                 preferred_element_type=jnp.float32)   # (S, H)

    # Softmax over the sequence (sublane) axis, independently per head column.
    m = jnp.max(scores, axis=0, keepdims=True)                # (1, H)
    p = jnp.exp(scores - m)                                   # (S, H)
    l = jnp.sum(p, axis=0, keepdims=True)                     # (1, H)
    # TODO(synk): pl.reciprocal(approx=True) is cheaper (EUP slot) but needs the
    # 1e-5 comparison tolerance re-verified on hardware; keep the exact path here.
    attn = p * pl.reciprocal(l, approx=False)                 # (S, H)

    # Broadcast each head's attention weights back onto its Dh lanes,
    # then reduce over the sequence axis to get the per-head context.
    attn_full = jax.lax.dot_general(attn, sel, (((1,), (1,)), ((), ())),
                                    preferred_element_type=jnp.float32)  # (S, E)
    ctx = jnp.sum(attn_full * v, axis=0, keepdims=True)       # (1, E)

    # Output projection.
    out_ref[...] = (jnp.dot(ctx, w[:, 3 * E:], preferred_element_type=jnp.float32)
                    + b[:, 3 * E:])


def multi_head_attention(x, in_proj_weight, in_proj_bias,
                         out_proj_weight, out_proj_bias,
                         *, embed_dim, num_head):
    S, E = x.shape
    assert E == embed_dim and E % num_head == 0

    # Pack weights (pre-transposed to (in, out) layout) and biases so the
    # kernel takes only 3 inputs: x, W_all (E, 4E), b_all (1, 4E).
    w_all = jnp.concatenate([in_proj_weight.T, out_proj_weight.T],
                            axis=1).astype(jnp.float32)            # (E, 4E)
    b_all = jnp.concatenate([in_proj_bias, out_proj_bias]
                            ).reshape(1, 4 * E).astype(jnp.float32)  # (1, 4E)

    kernel = functools.partial(mha_kernel, embed_dim=E, num_head=num_head)

    flops = (2 * S * E * 3 * E          # fused QKV projection
             + 2 * S * E * num_head     # score selector matmul
             + 2 * S * num_head * E     # attention expand matmul
             + 2 * E * E)               # output projection
    bytes_accessed = 4 * (x.size + w_all.size + b_all.size + E)

    vmem_spec = pl.BlockSpec(memory_space=pltpu.MemorySpace.VMEM)
    return pl.pallas_call(
        kernel,
        out_shape=jax.ShapeDtypeStruct((1, E), jnp.float32),
        in_specs=[vmem_spec, vmem_spec, vmem_spec],
        out_specs=vmem_spec,
        cost_estimate=pl.CostEstimate(flops=flops,
                                      transcendentals=S * num_head,
                                      bytes_accessed=bytes_accessed),
    )(x, w_all, b_all)


def multi_head_attention_ref(x, in_proj_weight, in_proj_bias,
                             out_proj_weight, out_proj_bias,
                             *, embed_dim, num_head):
    """Pure-JAX reference mirroring the PyTorch forward exactly."""
    E, H = embed_dim, num_head
    Dh = E // H
    q = x[:1] @ in_proj_weight[:E].T + in_proj_bias[:E]
    k = x @ in_proj_weight[E:2 * E].T + in_proj_bias[E:2 * E]
    v = x @ in_proj_weight[2 * E:].T + in_proj_bias[2 * E:]
    q = q.reshape(-1, H, Dh).transpose(1, 0, 2)        # (H, 1, Dh)
    k = k.reshape(-1, H, Dh).transpose(1, 2, 0)        # (H, Dh, S)
    v = v.reshape(-1, H, Dh).transpose(1, 0, 2)        # (H, S, Dh)
    dot = jnp.matmul(q, k) * (1.0 / Dh ** 0.5)         # (H, 1, S)
    attn = jax.nn.softmax(dot, axis=-1)
    out = jnp.matmul(attn, v)                          # (H, 1, Dh)
    out = out.transpose(1, 0, 2).reshape(-1, E)        # (1, E)
    return out @ out_proj_weight.T + out_proj_bias


if __name__ == "__main__":
    embed_dim = 32
    num_head = 4
    seq = 8

    key = jax.random.PRNGKey(0)
    k_x, k_w, k_b, k_ow, k_ob = jax.random.split(key, 5)

    x = jax.random.normal(k_x, (seq, embed_dim), dtype=jnp.float32)
    in_proj_weight = 0.1 * jax.random.normal(k_w, (3 * embed_dim, embed_dim), jnp.float32)
    in_proj_bias = 0.1 * jax.random.normal(k_b, (3 * embed_dim,), jnp.float32)
    out_proj_weight = 0.1 * jax.random.normal(k_ow, (embed_dim, embed_dim), jnp.float32)
    out_proj_bias = 0.1 * jax.random.normal(k_ob, (embed_dim,), jnp.float32)

    out = multi_head_attention(x, in_proj_weight, in_proj_bias,
                               out_proj_weight, out_proj_bias,
                               embed_dim=embed_dim, num_head=num_head)
    out = jax.block_until_ready(out)

    ref = multi_head_attention_ref(x, in_proj_weight, in_proj_bias,
                                   out_proj_weight, out_proj_bias,
                                   embed_dim=embed_dim, num_head=num_head)

    assert out.shape == (1, embed_dim)
    assert jnp.allclose(out, ref, atol=1e-5, rtol=1e-5), "mismatch vs reference"
    print("KERNEL_OK")
</pallas_src>

<mosaic_0001>
module attributes {stable_mosaic.version = 11 : i64} {
  func.func @mha_kernel(%arg0: memref<8x32xf32, #tpu.memory_space<vmem>>, %arg1: memref<32x128xf32, #tpu.memory_space<vmem>>, %arg2: memref<1x128xf32, #tpu.memory_space<vmem>>, %arg3: memref<1x32xf32, #tpu.memory_space<vmem>>) attributes {dimension_semantics = [], scalar_prefetch = 0 : i64, scratch_operands = 0 : i64, tpu.core_type = #tpu.core_type<tc>} {
    %c0 = arith.constant 0 : index
    %c0_0 = arith.constant 0 : index
    %0 = vector.load %arg0[%c0, %c0_0] : memref<8x32xf32, #tpu.memory_space<vmem>>, vector<8x32xf32>
    %c0_1 = arith.constant 0 : index
    %c0_2 = arith.constant 0 : index
    %1 = vector.load %arg1[%c0_1, %c0_2] : memref<32x128xf32, #tpu.memory_space<vmem>>, vector<32x128xf32>
    %c0_3 = arith.constant 0 : index
    %c0_4 = arith.constant 0 : index
    %2 = vector.load %arg2[%c0_3, %c0_4] : memref<1x128xf32, #tpu.memory_space<vmem>>, vector<1x128xf32>
    %3 = vector.extract_strided_slice %1 {offsets = [0, 0], sizes = [32, 96], strides = [1, 1]} : vector<32x128xf32> to vector<32x96xf32>
    %cst = arith.constant dense<0.000000e+00> : vector<8x96xf32>
    %4 = tpu.matmul %0, %3, %cst {dimension_numbers = #tpu.dot_dimension_numbers<[1], [0], [0], [1], [0, 0, 1, 1], [], []>} : vector<8x32xf32>, vector<32x96xf32>, vector<8x96xf32> -> vector<8x96xf32>
    %5 = vector.extract_strided_slice %2 {offsets = [0, 0], sizes = [1, 96], strides = [1, 1]} : vector<1x128xf32> to vector<1x96xf32>
    %6 = vector.broadcast %5 : vector<1x96xf32> to vector<8x96xf32>
    %7 = arith.addf %4, %6 : vector<8x96xf32>
    %8 = vector.extract_strided_slice %7 {offsets = [0, 0], sizes = [1, 32], strides = [1, 1]} : vector<8x96xf32> to vector<1x32xf32>
    %cst_5 = arith.constant 0.353553385 : f32
    %9 = vector.broadcast %cst_5 : f32 to vector<1x32xf32>
    %10 = arith.mulf %8, %9 : vector<1x32xf32>
    %11 = vector.extract_strided_slice %7 {offsets = [0, 32], sizes = [8, 32], strides = [1, 1]} : vector<8x96xf32> to vector<8x32xf32>
    %12 = vector.extract_strided_slice %7 {offsets = [0, 64], sizes = [8, 32], strides = [1, 1]} : vector<8x96xf32> to vector<8x32xf32>
    %13 = tpu.iota {dimensions = array<i32: 0>} : vector<32x4xi32>
    %14 = tpu.iota {dimensions = array<i32: 1>} : vector<32x4xi32>
    %c8_i32 = arith.constant 8 : i32
    %15 = vector.broadcast %c8_i32 : i32 to vector<32x4xi32>
    %16 = arith.muli %14, %15 : vector<32x4xi32>
    %17 = arith.cmpi sge, %13, %16 : vector<32x4xi32>
    %c1_i32 = arith.constant 1 : i32
    %18 = vector.broadcast %c1_i32 : i32 to vector<32x4xi32>
    %19 = arith.addi %14, %18 : vector<32x4xi32>
    %c8_i32_6 = arith.constant 8 : i32
    %20 = vector.broadcast %c8_i32_6 : i32 to vector<32x4xi32>
    %21 = arith.muli %19, %20 : vector<32x4xi32>
    %22 = arith.cmpi slt, %13, %21 : vector<32x4xi32>
    %23 = arith.andi %17, %22 : vector<32x4xi1>
    %cst_7 = arith.constant 1.000000e+00 : f32
    %cst_8 = arith.constant 0.000000e+00 : f32
    %24 = vector.broadcast %cst_7 : f32 to vector<32x4xf32>
    %25 = vector.broadcast %cst_8 : f32 to vector<32x4xf32>
    %26 = arith.select %23, %24, %25 : vector<32x4xi1>, vector<32x4xf32>
    %27 = vector.broadcast %10 : vector<1x32xf32> to vector<8x32xf32>
    %28 = arith.mulf %27, %11 : vector<8x32xf32>
    %cst_9 = arith.constant dense<0.000000e+00> : vector<8x4xf32>
    %29 = tpu.matmul %28, %26, %cst_9 {dimension_numbers = #tpu.dot_dimension_numbers<[1], [0], [0], [1], [0, 0, 1, 1], [], []>} : vector<8x32xf32>, vector<32x4xf32>, vector<8x4xf32> -> vector<8x4xf32>
    %cst_10 = arith.constant dense<0xFF800000> : vector<4xf32>
    %30 = vector.multi_reduction <maximumf>, %29, %cst_10 [0] : vector<8x4xf32> to vector<4xf32>
    %31 = vector.shape_cast %30 : vector<4xf32> to vector<1x4xf32>
    %32 = vector.broadcast %31 : vector<1x4xf32> to vector<8x4xf32>
    %33 = arith.subf %29, %32 : vector<8x4xf32>
    %34 = math.exp %33 : vector<8x4xf32>
    %cst_11 = arith.constant dense<0.000000e+00> : vector<4xf32>
    %35 = vector.multi_reduction <add>, %34, %cst_11 [0] : vector<8x4xf32> to vector<4xf32>
    %36 = vector.shape_cast %35 : vector<4xf32> to vector<1x4xf32>
    %37 = tpu.reciprocal %36 : vector<1x4xf32> -> vector<1x4xf32>
    %38 = vector.broadcast %37 : vector<1x4xf32> to vector<8x4xf32>
    %39 = arith.mulf %34, %38 : vector<8x4xf32>
    %cst_12 = arith.constant dense<0.000000e+00> : vector<8x32xf32>
    %40 = tpu.matmul %39, %26, %cst_12 {dimension_numbers = #tpu.dot_dimension_numbers<[1], [1], [0], [0], [0, 0, 1, 0], [], []>} : vector<8x4xf32>, vector<32x4xf32>, vector<8x32xf32> -> vector<8x32xf32>
    %41 = arith.mulf %40, %12 : vector<8x32xf32>
    %cst_13 = arith.constant dense<0.000000e+00> : vector<32xf32>
    %42 = vector.multi_reduction <add>, %41, %cst_13 [0] : vector<8x32xf32> to vector<32xf32>
    %43 = vector.shape_cast %42 : vector<32xf32> to vector<1x32xf32>
    %44 = vector.extract_strided_slice %1 {offsets = [0, 96], sizes = [32, 32], strides = [1, 1]} : vector<32x128xf32> to vector<32x32xf32>
    %cst_14 = arith.constant dense<0.000000e+00> : vector<1x32xf32>
    %45 = tpu.matmul %43, %44, %cst_14 {dimension_numbers = #tpu.dot_dimension_numbers<[1], [0], [0], [1], [0, 0, 1, 1], [], []>} : vector<1x32xf32>, vector<32x32xf32>, vector<1x32xf32> -> vector<1x32xf32>
    %46 = vector.extract_strided_slice %2 {offsets = [0, 96], sizes = [1, 32], strides = [1, 1]} : vector<1x128xf32> to vector<1x32xf32>
    %47 = arith.addf %45, %46 : vector<1x32xf32>
    %c0_15 = arith.constant 0 : index
    %c0_16 = arith.constant 0 : index
    %48 = vector.load %arg3[%c0_15, %c0_16] : memref<1x32xf32, #tpu.memory_space<vmem>>, vector<1x32xf32>
    tpu.vector_store %arg3[%c0_15, %c0_16], %47 {strides = array<i32>} : memref<1x32xf32, #tpu.memory_space<vmem>>, vector<1x32xf32>,
    return
  }
}

</mosaic_0001>

<bundles_post_ra>
// kernel: tpu_custom_call.1
= control target key start
LH: loop header
LB: loop body
LE: loop exit
PB: predicated region body
PF: predicated region fallthrough
CT: control target
= control target key end

     0   :  { %8 = vsyncpa [#allocation3], 0  ;;  %s497_s0 = inlined_call_operand.hbm [shape: f32[8,32], index: 0, kind: input, shape index: {}]   ;;  %s498_s1 = inlined_call_operand.hbm [shape: f32[32,128], index: 1, kind: input, shape index: {}]   ;;  %s499_s2 = inlined_call_operand.vmem [shape: f32[1,128], index: 2, kind: input, shape index: {}]   ;;  %s500_s3 = inlined_call_operand.hbm [shape: f32[1,32], index: 3, kind: output, shape index: {}]  }
   0x1   :  { %9 = vsyncpa [#allocation6], 0 }
   0x2   :  { %10 = vsyncpa [#allocation4], 0  ;;  %s16_s14 = sshll.u32 %s497_s0, 4  ;;  %s390_s15 = smov [#allocation2]   ;;  %s17_s14 = int_to_ptr.hbm [resolvable:$true] %s16_s14 }
   0x3   :  { %s18_s16 = sshll.u32 %s390_s15, 4  ;;  %s26_s19 = sshll.u32 %s498_s1, 4  ;;  %s19_s16 = int_to_ptr.vmem [resolvable:$true] %s18_s16  ;;  %s27_s19 = int_to_ptr.hbm [resolvable:$true] %s26_s19 }
   0x4   :  { %21 = dma.hbm_to_vmem [thread:$0]  %s17_s14, 128, %s19_s16, [#allocation3]  }
   0x5   :  { %s391_s20 = smov [#allocation5]   ;;  %s392_s22 = smov 128  }
   0x6   :  { %s28_s21 = sshll.u32 %s391_s20, 4  ;;  %s393_s23 = smov 8   ;;  %s29_s21 = int_to_ptr.vmem [resolvable:$true] %s28_s21 }
   0x7   :  { %34 = dma.hbm_to_vmem [thread:$0]  %s27_s19, 512, %s29_s21, [#allocation6], %s392_s22, %s392_s22, %s393_s23  }
   0x8   :  { %384 = dma.done.wait [#allocation3], 128  }
   0x9   :  { %385 = vsyncadd [#allocation3], 4294967168 }
   0xa   :  { %386 = dma.done.wait [#allocation6], 512  }
   0xb   :  { %387 = vsyncadd [#allocation6], 4294966784  ;;  %v426_v0 = vld [vmem:[#allocation5 + $0x18] sm:$0xff]  ;;  %v428_v1 = vld [vmem:[#allocation5 + $0x10] sm:$0xff]  ;;  %vm54_vm0 = vcmask 261120   ;;  %v79_v6 = vlaneseq  ;;  %v394_v16 = vmov 1.0  }
   0xc   :  { %70 = vmatpush.msra.mxu0 %v426_v0  ;;  %v431_v2 = vld [vmem:[#allocation5 + $0x8] sm:$0xff]  ;;  %v433_v3 = vld [vmem:[#allocation5] sm:$0xff]  ;;  %v45_v5 = vld [vmem:[#allocation2] sm:$0xff]  ;;  %s395_s24 = smov 96   ;;  %s396_s25 = smov 64   ;;  %vm134_vm13 = vcmask 31744   ;;  %v297_v44 = vpack.i.bf16 %v428_v1, %v426_v0 }
   0xd   :  { %v302_v4 = vpack.i.bf16 %v433_v3, %v431_v2  ;;  %v80_v7 = vshrl.u32 %v79_v6, 7  ;;  %v85_v8 = vand.u32 127, %v79_v6  ;;  %v307_v19 = vld [vmem:[%s499_s2] ss:$0 sm:$0xff]  ;;  %s397_s2 = smov 32   ;;  %v398_v32 = vmov 0.0  }
   0xe   :  { %71 = vmatpush.msra.mxu0 %v428_v1  ;;  %229 = vrot.lane.b32.xlu2 %v307_v19, %s397_s2  ;;  %s399_s26 = smov [#allocation7]   ;;  %s264_s30 = sshll.u32 %s500_s3, 4  ;;  %s265_s30 = int_to_ptr.hbm [resolvable:$true] %s264_s30 }
   0xf   :  { %v83_v9 = vadd.s32 24, %v80_v7  ;;  %v86_v10 = vmul.u32 8, %v85_v8  ;;  %v91_v11 = vadd.s32 1, %v85_v8  ;;  %v82_v12 = vadd.s32 16, %v80_v7  ;;  %298 = vrot.lane.b32.xlu1 %v297_v44, %s397_s2  ;;  %s262_s27 = sshll.u32 %s399_s26, 4  ;;  %s263_s27 = int_to_ptr.vmem [resolvable:$true] %s262_s27 }
  0x10   :  { %72 = vmatpush.msra.mxu0 %v431_v2  ;;  %v81_v13 = vadd.s32 8, %v80_v7 }
  0x11   :  { %vm90_vm1 = vcmp.ge.s32.totalorder %v83_v9, %v86_v10  ;;  %v92_v14 = vmul.u32 8, %v91_v11  ;;  %vm89_vm2 = vcmp.ge.s32.totalorder %v82_v12, %v86_v10  ;;  %vm87_vm10 = vcmp.ge.s32.totalorder %v80_v7, %v86_v10 }
  0x12   :  { %73 = vmatpush.msra.mxu0 %v433_v3  ;;  %vm88_vm5 = vcmp.ge.s32.totalorder %v81_v13, %v86_v10 }
  0x13   :  { %275 = vmatmul.msk.f32.vlgmr.msra.gmra.mxu0 %vm54_vm0, %v45_v5  ;;  %vm96_vm3 = vcmp.lt.s32.totalorder %v83_v9, %v92_v14  ;;  %vm95_vm4 = vcmp.lt.s32.totalorder %v82_v12, %v92_v14  ;;  %vm94_vm6 = vcmp.lt.s32.totalorder %v81_v13, %v92_v14  ;;  %vm93_vm11 = vcmp.lt.s32.totalorder %v80_v7, %v92_v14 }
  0x14   :  { %vm441_vm7 = vmand %vm90_vm1, %vm96_vm3  ;;  %vm255_vm3 = vcmask 253952  }
  0x15   :  { %276 = vmatpush.msk.msra.mxu1 %vm441_vm7, %v394_v16  ;;  %vm447_vm8 = vmand %vm89_vm2, %vm95_vm4  ;;  %v104_v33 = vsel %vm441_vm7, 1.0, %v398_v32 }
  0x16   :  { %vm451_vm9 = vmand %vm88_vm5, %vm94_vm6  ;;  %281 = vmatpush.xpose.msk.msra.mxu2 %vm134_vm13, %v104_v33  ;;  %v103_v35 = vsel %vm447_vm8, 1.0, %v398_v32 }
  0x17   :  { %277 = vmatpush.msk.msra.mxu1 %vm447_vm8, %v394_v16  ;;  %vm462_vm12 = vmand %vm87_vm10, %vm93_vm11  ;;  %v102_v38 = vsel %vm451_vm9, 1.0, %v398_v32  ;;  %303 = vrot.lane.b32.xlu1 %v302_v4, %s397_s2 }
  0x18   :  { %v101_v41 = vsel %vm462_vm12, 1.0, %v398_v32 }
  0x19   :  { %278 = vmatpush.msk.msra.mxu1 %vm451_vm9, %v394_v16 }
  0x1a   :  { %282 = vmatpush.xpose.msk.msra.mxu2 %vm134_vm13, %v103_v35 }
  0x1b   :  { %279 = vmatpush.msk.msra.mxu1 %vm462_vm12, %v394_v16 }
  0x1e   :  { %283 = vmatpush.xpose.msk.msra.mxu2 %vm134_vm13, %v102_v38 }
  0x22   :  { %284 = vmatpush.xpose.msk.msra.mxu2 %vm134_vm13, %v101_v41 }
  0x68   :  { %v230_v14 = vpop.permute.xlu2 %229 }
  0x81   :  { %v299_v62 = vpop.permute.xlu1 %298 }
  0x82   :  { %v300_v63 = vunpack.i.l.bf16 %v299_v62  ;;  %v301_v0 = vunpack.i.h.bf16 %v299_v62 }
  0x84   :  { %247 = vmatpush.msra.mxu3 %v300_v63 }
  0x86   :  { %248 = vmatpush.msra.mxu3 %v301_v0 }
  0x89   :  { %v304_v1 = vpop.permute.xlu1 %303 }
  0x8a   :  { %v305_v2 = vunpack.i.l.bf16 %v304_v1  ;;  %v306_v3 = vunpack.i.h.bf16 %v304_v1 }
  0x8c   :  { %249 = vmatpush.msra.mxu3 %v305_v2 }
  0x8e   :  { %250 = vmatpush.msra.mxu3 %v306_v3 }
  0x90   :  { %v75_v20 = vpop.f32.mrf.mxu0 }
  0x91   :  { %v76_v21 = vadd.f32 %v307_v19, %v75_v20 }
  0x93   :  { %107 = vrot.lane.b32.xlu0 %v76_v21, %s395_s24  ;;  %v78_v23 = vmul.f32 0.35355338, %v76_v21 }
  0x95   :  { %v105_v24 = vperm.slane %v78_v23, 0 }
  0x9b   :  { %202 = vrot.lane.b32.xlu0 %v76_v21, %s396_s25 }
 0x105   :  { %v108_v25 = vpop.permute.xlu0 %107 }
 0x106   :  { %v110_v26 = vmul.f32 %v108_v25, %v105_v24 }
 0x108   :  { %280 = vmatmul.msk.f32.vlgmr.msra.gmra.mxu1 %vm54_vm0, %v110_v26 }
 0x10d   :  { %v203_v4 = vpop.permute.xlu0 %202 }
 0x185   :  { %v131_v27 = vpop.f32.mrf.mxu1 }
 0x186   :  { %v135_v28 = vsel %vm134_vm13, %v131_v27, -inf }
 0x187   :  { %v136_v29 = vrot.slane %v135_v28, 4 }
 0x189   :  { %v137_v30 = vmax.f32 %v135_v28, %v136_v29 }
 0x18b   :  { %v138_v31 = vrot.slane %v137_v30, 2 }
 0x18d   :  { %v139_v34 = vmax.f32 %v137_v30, %v138_v31 }
 0x18f   :  { %v140_v36 = vrot.slane %v139_v34, 1 }
 0x191   :  { %v141_v37 = vmax.f32 %v139_v34, %v140_v36 }
 0x193   :  { %v142_v39 = vsub.f32 %v131_v27, %v141_v37 }
 0x195   :  { %v143_v40 = vmul.f32 1.442695, %v142_v39 }
 0x197   :  { %308 = vpow2.f32 %v143_v40 }
 0x19d   :  { %v309_v42 = vpop.eup %308 }
 0x19e   :  { %v145_v43 = vsel %vm134_vm13, %v309_v42, 0.0 }
 0x19f   :  { %v146_v45 = vrot.slane %v145_v43, 4 }
 0x1a1   :  { %v147_v46 = vadd.f32 %v146_v45, %v145_v43 }
 0x1a3   :  { %v148_v47 = vrot.slane %v147_v46, 2 }
 0x1a5   :  { %v149_v48 = vadd.f32 %v148_v47, %v147_v46 }
 0x1a7   :  { %v150_v49 = vrot.slane %v149_v48, 1 }
 0x1a9   :  { %v151_v50 = vadd.f32 %v150_v49, %v149_v48 }
 0x1ab   :  { %310 = vrcp.f32 %v151_v50  ;;  %v163_v54 = vand.u32 2147483648, %v151_v50  ;;  %v161_v56 = vand.u32 2147483647, %v151_v50  ;;  %vm157_vm15 = vweird.f32 %v151_v50 }
 0x1ad   :  { %v164_v58 = vor.u32 1.1754944e-38, %v163_v54  ;;  %vm162_vm2 = vcmp.eq.f32.partialorder %v161_v56, 8.507059e+37 }
 0x1b1   :  { %v311_v51 = vpop.eup %310 }
 0x1b2   :  { %v153_v52 = vmul.f32 %v311_v51, %v151_v50  ;;  %vm158_vm14 = vweird.f32 %v311_v51 }
 0x1b3   :  { %vm159_vm1 = vmor %vm157_vm15, %vm158_vm14 }
 0x1b4   :  { %v154_v53 = vsub.f32 1.0, %v153_v52 }
 0x1b6   :  { %v155_v55 = vmul.f32 %v311_v51, %v154_v53 }
 0x1b8   :  { %v156_v57 = vadd.f32 %v311_v51, %v155_v55 }
 0x1ba   :  { %v160_v59 = vsel %vm159_vm1, %v311_v51, %v156_v57 }
 0x1bb   :  { %v165_v60 = vsel %vm162_vm2, %v164_v58, %v160_v59 }
 0x1bc   :  { %v166_v61 = vmul.f32 %v309_v42, %v165_v60 }
 0x1be   :  { %285 = vmatmul.msk.f32.vlgmr.msra.gmra.mxu2 %vm134_vm13, %v166_v61 }
 0x241   :  { %v199_v5 = vpop.f32.mrf.mxu2 }
 0x242   :  { %v205_v6 = vmul.f32 %v203_v4, %v199_v5 }
 0x244   :  { %v206_v7 = vsel %vm54_vm0, %v205_v6, 0.0 }
 0x245   :  { %v207_v8 = vrot.slane %v206_v7, 4 }
 0x247   :  { %v208_v9 = vadd.f32 %v207_v8, %v206_v7 }
 0x249   :  { %v209_v10 = vrot.slane %v208_v9, 2 }
 0x24b   :  { %v210_v11 = vadd.f32 %v209_v10, %v208_v9 }
 0x24d   :  { %v211_v12 = vrot.slane %v210_v11, 1 }
 0x24f   :  { %v212_v13 = vadd.f32 %v211_v12, %v210_v11 }
 0x251   :  { %286 = vmatmul.msk.f32.vlgmr.msra.gmra.mxu3 %vm54_vm0, %v212_v13 }
 0x2d4   :  { %v252_v15 = vpop.f32.mrf.mxu3 }
 0x2d5   :  { %v253_v16 = vadd.f32 %v252_v15, %v230_v14 }
 0x2d7   :  { %256 = vst.msk [vmem:[#allocation7] sm:$0x1] %vm255_vm3, %v253_v16 }
 0x2d8   :  { %267 = dma.vmem_to_hbm [thread:$0]  %s263_s27, 16, %s265_s30, [#allocation4]  }
 0x2d9   :  { %388 = dma.done.wait [#allocation4], 16  }
 0x2da   :  { %389 = vsyncadd [#allocation4], 4294967280 }
 0x2db   :  { %272 = vsyncpa [#allocation3], 1 }
 0x2dc   :  { %273 = vsyncpa [#allocation6], 1 }
 0x2dd   :  { %274 = vsyncpa [#allocation4], 1 }

</bundles_post_ra>
